<compile_context>
chip_gen: v6e
topology: v6e:2x2x1
jax: 0.10.0
libtpu: 0.0.40
codegen_flags: <defaults>
</compile_context>

<pallas_src>
import jax
import jax.numpy as jnp
from jax.experimental import pallas as pl
from jax.experimental.pallas import tpu as pltpu

LANE = 128       # TPU lane width
MAX_TILE_B = 512  # batch rows per grid step (amortizes per-step overhead)


def _mlp_kernel(x_ref, w1_ref, b1_ref, w2_ref, b2_ref, o_ref):
    # x:  (TILE_B, D)       w1: (D, Hp)     b1: (1, Hp)
    # w2: (1, Hp) row       b2: (1,) scalar in SMEM
    # o:  (1, TILE_B)       lane-dense output row
    x = x_ref[...]
    # Layer 1 on the MXU with explicit f32 accumulation.
    h = jnp.dot(x, w1_ref[...], preferred_element_type=jnp.float32)
    h = jnp.maximum(h + b1_ref[...], 0.0)  # bias + ReLU on the VPU (f32)
    # Layer 2 (output width 1): VPU multiply + cross-lane reduction.  The zero-padded
    # hidden lanes contribute exactly 0 (b1 pad = 0 -> relu = 0, w2 pad = 0).
    y = jnp.sum(h * w2_ref[...], axis=-1) + b2_ref[0]  # (TILE_B,)
    o_ref[...] = y[None, :].astype(o_ref.dtype)  # lane-dense store


def pack_params(w1, b1, w2, b2, hidden_pad=None):
    """One-time repack of PyTorch-layout params into the kernel layout.

    w1 (H, D), b1 (H,), w2 (1, H), b2 (1,)  ->
      w1p (D, Hp), b1p (1, Hp), w2p (1, Hp), b2p (1,)
    Hp = H rounded up to a multiple of 128; padding is zeros, so results are identical.
    Do this once at init, NOT per forward call.
    """
    hidden, _dim = w1.shape
    if hidden_pad is None:
        hidden_pad = ((hidden + LANE - 1) // LANE) * LANE
    pad = hidden_pad - hidden
    w1p = jnp.pad(jnp.transpose(w1).astype(jnp.float32), ((0, 0), (0, pad)))
    b1p = jnp.pad(b1.astype(jnp.float32), (0, pad)).reshape(1, hidden_pad)
    w2p = jnp.pad(w2.reshape(1, hidden).astype(jnp.float32), ((0, 0), (0, pad)))
    b2p = b2.reshape(1).astype(jnp.float32)
    return w1p, b1p, w2p, b2p


def network_u_forward(x, packed_params):
    """x: (B, dim) f32, packed_params from pack_params.  Returns (B, 1) f32."""
    w1p, b1p, w2p, b2p = packed_params
    B, dim = x.shape
    hp = w1p.shape[1]

    # Whole batch in one tile when small (block == full array is always legal);
    # otherwise lane-aligned tiles up to MAX_TILE_B rows.  Edge blocks are handled
    # (masked) by the pipeline automatically.
    if B <= LANE:
        tile_b = B
    elif B >= MAX_TILE_B:
        tile_b = MAX_TILE_B
    else:
        tile_b = LANE
    n_tiles = pl.cdiv(B, tile_b)

    out_row = pl.pallas_call(
        _mlp_kernel,
        out_shape=jax.ShapeDtypeStruct((1, B), jnp.float32),
        grid=(n_tiles,),
        in_specs=[
            pl.BlockSpec((tile_b, dim), lambda i: (i, 0)),      # x tile (pipelined)
            pl.BlockSpec((dim, hp), lambda i: (0, 0)),          # w1 resident in VMEM
            pl.BlockSpec((1, hp), lambda i: (0, 0)),            # b1 resident in VMEM
            pl.BlockSpec((1, hp), lambda i: (0, 0)),            # w2 row resident in VMEM
            pl.BlockSpec(memory_space=pltpu.MemorySpace.SMEM),  # b2 scalar in SMEM
        ],
        out_specs=pl.BlockSpec((1, tile_b), lambda i: (0, i)),  # lane-dense output row
        compiler_params=pltpu.CompilerParams(
            dimension_semantics=("parallel",),
        ),
    )(x, w1p, b1p, w2p, b2p)

    return out_row.reshape(B, 1)  # contiguous reshape, effectively free


def init_params(key, dim, hidden_size=100):
    """Deterministic init mimicking nn.Linear default (uniform +/- 1/sqrt(fan_in))."""
    k1, k2, k3, k4 = jax.random.split(key, 4)
    bound1 = 1.0 / jnp.sqrt(dim)
    w1 = jax.random.uniform(k1, (hidden_size, dim), jnp.float32, -bound1, bound1)
    b1 = jax.random.uniform(k2, (hidden_size,), jnp.float32, -bound1, bound1)
    bound2 = 1.0 / jnp.sqrt(hidden_size)
    w2 = jax.random.uniform(k3, (1, hidden_size), jnp.float32, -bound2, bound2)
    b2 = jax.random.uniform(k4, (1,), jnp.float32, -bound2, bound2)
    return w1, b1, w2, b2


if __name__ == "__main__":
    B, dim, hidden = 8, 32, 100  # hidden_size=100 matches the module default

    key = jax.random.PRNGKey(0)
    kx, kp, kx2, kx3 = jax.random.split(key, 4)
    x = jax.random.normal(kx, (B, dim), jnp.float32)
    w1, b1, w2, b2 = init_params(kp, dim, hidden)

    packed = pack_params(w1, b1, w2, b2)  # one-time repack, outside the hot path

    def ref_fwd(xv):
        return jnp.maximum(xv @ w1.T + b1, 0.0) @ w2.T + b2

    # Small batch: single-tile (block == full array) path.
    out = jax.block_until_ready(network_u_forward(x, packed))
    assert out.shape == (B, 1)
    assert jnp.allclose(out, ref_fwd(x), atol=1e-4, rtol=1e-4), "mismatch (B=8)"

    # Large batch: multi-tile grid with 512-row tiles, lane-dense stores.
    B2 = 1024
    x2 = jax.random.normal(kx2, (B2, dim), jnp.float32)
    out2 = jax.block_until_ready(network_u_forward(x2, packed))
    assert out2.shape == (B2, 1)
    assert jnp.allclose(out2, ref_fwd(x2), atol=1e-4, rtol=1e-4), "mismatch (B=1024)"

    # Ragged batch: exercises the masked edge block on both x and the output row.
    B3 = 300
    x3 = jax.random.normal(kx3, (B3, dim), jnp.float32)
    out3 = jax.block_until_ready(network_u_forward(x3, packed))
    assert out3.shape == (B3, 1)
    assert jnp.allclose(out3, ref_fwd(x3), atol=1e-4, rtol=1e-4), "mismatch (B=300)"

    print("KERNEL_OK")
</pallas_src>

<mosaic_0001>
module attributes {stable_mosaic.version = 11 : i64} {
  func.func @_mlp_kernel(%arg0: i32, %arg1: memref<8x32xf32, #tpu.memory_space<vmem>>, %arg2: memref<32x128xf32, #tpu.memory_space<vmem>>, %arg3: memref<1x128xf32, #tpu.memory_space<vmem>>, %arg4: memref<1x128xf32, #tpu.memory_space<vmem>>, %arg5: memref<1xf32, #tpu.memory_space<smem>>, %arg6: memref<1x8xf32, #tpu.memory_space<vmem>>) attributes {dimension_semantics = [#tpu.dimension_semantics<parallel>], iteration_bounds = array<i64: 1>, scalar_prefetch = 0 : i64, scratch_operands = 0 : i64, tpu.core_type = #tpu.core_type<tc>, window_params = [{transform_indices = @transform_0, window_bounds = array<i64: 8, 32>}, {pipeline_mode = #tpu.pipeline_mode<synchronous>, transform_indices = @transform_1, window_bounds = array<i64: 32, 128>}, {pipeline_mode = #tpu.pipeline_mode<synchronous>, transform_indices = @transform_2, window_bounds = array<i64: 1, 128>}, {pipeline_mode = #tpu.pipeline_mode<synchronous>, transform_indices = @transform_3, window_bounds = array<i64: 1, 128>}, {transform_indices = @transform_4, window_bounds = array<i64: 1>}, {transform_indices = @transform_5, window_bounds = array<i64: 1, 8>}]} {
    %c0 = arith.constant 0 : index
    %c0_0 = arith.constant 0 : index
    %0 = vector.load %arg1[%c0, %c0_0] : memref<8x32xf32, #tpu.memory_space<vmem>>, vector<8x32xf32>
    %c0_1 = arith.constant 0 : index
    %c0_2 = arith.constant 0 : index
    %1 = vector.load %arg2[%c0_1, %c0_2] : memref<32x128xf32, #tpu.memory_space<vmem>>, vector<32x128xf32>
    %cst = arith.constant dense<0.000000e+00> : vector<8x128xf32>
    %2 = tpu.matmul %0, %1, %cst {dimension_numbers = #tpu.dot_dimension_numbers<[1], [0], [0], [1], [0, 0, 1, 1], [], []>} : vector<8x32xf32>, vector<32x128xf32>, vector<8x128xf32> -> vector<8x128xf32>
    %c0_3 = arith.constant 0 : index
    %c0_4 = arith.constant 0 : index
    %3 = vector.load %arg3[%c0_3, %c0_4] : memref<1x128xf32, #tpu.memory_space<vmem>>, vector<1x128xf32>
    %4 = vector.broadcast %3 : vector<1x128xf32> to vector<8x128xf32>
    %5 = arith.addf %2, %4 : vector<8x128xf32>
    %cst_5 = arith.constant 0.000000e+00 : f32
    %6 = vector.broadcast %cst_5 : f32 to vector<8x128xf32>
    %7 = arith.maximumf %5, %6 : vector<8x128xf32>
    %c0_6 = arith.constant 0 : index
    %c0_7 = arith.constant 0 : index
    %8 = vector.load %arg4[%c0_6, %c0_7] : memref<1x128xf32, #tpu.memory_space<vmem>>, vector<1x128xf32>
    %9 = vector.broadcast %8 : vector<1x128xf32> to vector<8x128xf32>
    %10 = arith.mulf %7, %9 : vector<8x128xf32>
    %cst_8 = arith.constant dense<0.000000e+00> : vector<8xf32>
    %11 = vector.multi_reduction <add>, %10, %cst_8 [1] : vector<8x128xf32> to vector<8xf32>
    %c0_9 = arith.constant 0 : index
    %12 = memref.load %arg5[%c0_9] : memref<1xf32, #tpu.memory_space<smem>>
    %13 = vector.broadcast %12 : f32 to vector<8xf32>
    %14 = arith.addf %11, %13 : vector<8xf32>
    %15 = vector.shape_cast %14 : vector<8xf32> to vector<1x8xf32>
    %c0_10 = arith.constant 0 : index
    %c0_11 = arith.constant 0 : index
    %16 = vector.load %arg6[%c0_10, %c0_11] : memref<1x8xf32, #tpu.memory_space<vmem>>, vector<1x8xf32>
    tpu.vector_store %arg6[%c0_10, %c0_11], %15 {strides = array<i32>} : memref<1x8xf32, #tpu.memory_space<vmem>>, vector<1x8xf32>,
    return
  }
  func.func @transform_0(%arg0: i32) -> (i32, i32) {
    %c0_i32 = arith.constant 0 : i32
    %c0_i32_0 = arith.constant 0 : i32
    return %arg0, %c0_i32 : i32, i32
  }
  func.func @transform_1(%arg0: i32) -> (i32, i32) {
    %c0_i32 = arith.constant 0 : i32
    %c0_i32_0 = arith.constant 0 : i32
    %c0_i32_1 = arith.constant 0 : i32
    return %c0_i32, %c0_i32_0 : i32, i32
  }
  func.func @transform_2(%arg0: i32) -> (i32, i32) {
    %c0_i32 = arith.constant 0 : i32
    %c0_i32_0 = arith.constant 0 : i32
    %c0_i32_1 = arith.constant 0 : i32
    return %c0_i32, %c0_i32_0 : i32, i32
  }
  func.func @transform_3(%arg0: i32) -> (i32, i32) {
    %c0_i32 = arith.constant 0 : i32
    %c0_i32_0 = arith.constant 0 : i32
    %c0_i32_1 = arith.constant 0 : i32
    return %c0_i32, %c0_i32_0 : i32, i32
  }
  func.func @transform_4(%arg0: i32) -> i32 {
    %c0_i32 = arith.constant 0 : i32
    %c0_i32_0 = arith.constant 0 : i32
    return %c0_i32 : i32
  }
  func.func @transform_5(%arg0: i32) -> (i32, i32) {
    %c0_i32 = arith.constant 0 : i32
    %c0_i32_0 = arith.constant 0 : i32
    return %c0_i32, %arg0 : i32, i32
  }
}

</mosaic_0001>

<bundles_post_ra>
// kernel: tpu_custom_call.1
= control target key start
LH: loop header
LB: loop body
LE: loop exit
PB: predicated region body
PF: predicated region fallthrough
CT: control target
= control target key end

     0   :  { %11 = vsyncpa [#allocation4], 0  ;;  %s321_s0 = inlined_call_operand.hbm [shape: f32[8,32], index: 0, kind: input, shape index: {}]   ;;  %s322_s1 = inlined_call_operand.hbm [shape: f32[32,128], index: 1, kind: input, shape index: {}]   ;;  %s323_s2 = inlined_call_operand.vmem [shape: f32[1,128], index: 2, kind: input, shape index: {}]   ;;  %s324_s3 = inlined_call_operand.vmem [shape: f32[1,128], index: 3, kind: input, shape index: {}]   ;;  %s325_s4 = inlined_call_operand.<no memory space> [shape: f32[1], index: 4, kind: input, shape index: {}]   ;;  %s326_s5 = inlined_call_operand.hbm [shape: f32[1,8], index: 5, kind: output, shape index: {}]  }
   0x1   :  { %12 = vsyncpa [#allocation7], 0 }
   0x2   :  { %13 = vsyncpa [#allocation5], 0  ;;  %s266_s18 = smov [#allocation3]   ;;  %s267_s20 = smov [#allocation6]  }
   0x3   :  { %s20_s19 = sshll.u32 %s266_s18, 4  ;;  %s29_s21 = sshll.u32 %s267_s20, 4  ;;  %s21_s19 = int_to_ptr.vmem [resolvable:$true] %s20_s19  ;;  %s30_s21 = int_to_ptr.vmem [resolvable:$true] %s29_s21 }
   0x4   :  { %s208_s22 = scalar_lea.vmem %s21_s19, 128  ;;  %p213_p1 = scmp.lt.s32.totalorder %s21_s19, %s21_s19 }
   0x5   :  { %p209_p0 = scmp.ne.s32.totalorder %s21_s19, %s208_s22  ;;  %p214_p2 = scmp.lt.s32.totalorder %s208_s22, %s208_s22 }
   0x7   :  { %p215_p3 = por %p214_p2, %p213_p1 }
   0x9   :  { %p216_p4 = pnand %p215_p3, %p209_p0 }
   0xb   :  { %219 = shalt.err (!%p216_p4)
}
   0xc   :  { %23 = dma.hbm_to_vmem [thread:$0]  %s321_s0, 128, %s21_s19, [#allocation4]  }
   0xd   :  { %s228_s25 = scalar_lea.vmem %s30_s21, 512  ;;  %p233_p6 = scmp.lt.s32.totalorder %s30_s21, %s30_s21 }
   0xe   :  { %p229_p5 = scmp.ne.s32.totalorder %s30_s21, %s228_s25  ;;  %p234_p7 = scmp.lt.s32.totalorder %s228_s25, %s228_s25 }
  0x10   :  { %p235_p8 = por %p234_p7, %p233_p6 }
  0x12   :  { %p236_p9 = pnand %p235_p8, %p229_p5 }
  0x14   :  { %239 = shalt.err (!%p236_p9)
}
  0x15   :  { %s268_s26 = smov 128   ;;  %s269_s27 = smov 8  }
  0x16   :  { %35 = dma.hbm_to_vmem [thread:$0]  %s322_s1, 512, %s30_s21, [#allocation7], %s268_s26, %s268_s26, %s269_s27  }
  0x17   :  { %260 = dma.done.wait [#allocation4], 128  }
  0x18   :  { %261 = vsyncadd [#allocation4], 4294967168 }
  0x19   :  { %262 = dma.done.wait [#allocation7], 512  }
  0x1a   :  { %263 = vsyncadd [#allocation7], 4294966784  ;;  %v270_v0 = vmov 0.0   ;;  %vm271_vm0 = vmmov 0   ;;  %v52_v1 = vld [vmem:[#allocation6 + $0x18] sm:$0xff]  ;;  %v51_v2 = vld [vmem:[#allocation6 + $0x10] sm:$0xff]  ;;  %v149_v13 = vlaneseq  ;;  %v146_v16 = vstv %s325_s4 }
  0x1b   :  { %182 = vmatprep.subr.mxu0 %v270_v0  ;;  %190 = vmatprep.mubr.msk.f32.mxu0 %vm271_vm0, %v270_v0  ;;  %v50_v3 = vld [vmem:[#allocation6 + $0x8] sm:$0xff]  ;;  %v49_v4 = vld [vmem:[#allocation6] sm:$0xff]  ;;  %v48_v5 = vld [vmem:[#allocation3] sm:$0xff]  ;;  %vm60_vm1 = vcmask 261120   ;;  %vm156_vm2 = vcmask 57344  }
  0x1c   :  { %183 = vmatpush3.msra.mxu0 %v52_v1  ;;  %v174_v6 = vld [vmem:[%s323_s2] ss:$0 sm:$0xff]  ;;  %v150_v14 = vand.u32 127, %v149_v13  ;;  %v152_v15 = vshrl.u32 %v149_v13, 7  ;;  %s272_s2 = smov [#allocation8]  }
  0x1d   :  { %184 = vmatprep.subr.mxu0 %v270_v0  ;;  %v176_v10 = vld [vmem:[%s324_s3] ss:$0 sm:$0xff]  ;;  %s164_s9 = sshll.u32 %s272_s2, 4  ;;  %s165_s9 = int_to_ptr.vmem [resolvable:$true] %s164_s9 }
  0x1e   :  { %185 = vmatpush3.msra.mxu0 %v51_v2  ;;  %v153_v17 = vsub.s32 %v150_v14, %v152_v15  ;;  %s240_s3 = scalar_lea.vmem %s165_s9, 16  ;;  %s244_s10 = scalar_lea.vmem %s165_s9, 32 }
  0x1f   :  { %186 = vmatprep.subr.mxu0 %v270_v0  ;;  %p241_p10 = scmp.ne.s32.totalorder %s165_s9, %s240_s3  ;;  %p245_p11 = scmp.lt.s32.totalorder %s165_s9, %s165_s9 }
  0x20   :  { %187 = vmatpush3.msra.mxu0 %v50_v3  ;;  %p246_p12 = scmp.lt.s32.totalorder %s244_s10, %s240_s3 }
  0x21   :  { %188 = vmatprep.subr.mxu0 %v270_v0 }
  0x22   :  { %189 = vmatpush3.msra.mxu0 %v49_v4  ;;  %p247_p13 = por %p246_p12, %p245_p11 }
  0x23   :  { %191 = vmatmul.mubr.msk.f32.vlgmr.msra.gmra.mxu0 %vm60_vm1, %v48_v5 }
  0x24   :  { %p248_p0 = pnand %p247_p13, %p241_p10 }
  0xe3   :  { %v130_v7 = vpop.f32.mrf.mxu0 }
  0xe4   :  { %v131_v8 = vadd.f32 %v174_v6, %v130_v7 }
  0xe5   :  { %v192_v9 = vpop.f32.mrf.mxu0 }
  0xe6   :  { %v134_v11 = vmax.f32 %v131_v8, 0.0 }
  0xe8   :  { %v142_v12 = vmul.f32 %v176_v10, %v134_v11 }
  0xea   :  { %143 = vadd.xlane.f32.xlu0 %v142_v12 }
 0x173   :  { %v144_v18 = vpop.xlane.xlu0 %143 }
 0x174   :  { %v147_v19 = vadd.f32 %v146_v16, %v144_v18 }
 0x176   :  { %v154_v20 = vrot.slane %v147_v19, %v153_v17 }
 0x178   :  { %157 = vst.msk [vmem:[#allocation8] sm:$0x1] %vm156_vm2, %v154_v20 }
 0x179   :  { %251 = shalt.err (!%p248_p0)
}
 0x17a   :  { %167 = dma.vmem_to_hbm [thread:$0]  %s165_s9, 16, %s326_s5, [#allocation5]  }
 0x17b   :  { %264 = dma.done.wait [#allocation5], 16  }
 0x17c   :  { %265 = vsyncadd [#allocation5], 4294967280 }
 0x17d   :  { %171 = vsyncpa [#allocation4], 1 }
 0x17e   :  { %172 = vsyncpa [#allocation7], 1 }
 0x17f   :  { %173 = vsyncpa [#allocation5], 1 }

</bundles_post_ra>
